<compile_context>
chip_gen: v6e
topology: v6e:2x2x1
jax: 0.10.0
libtpu: 0.0.40
codegen_flags: <defaults>
</compile_context>

<pallas_src>
import functools

import jax
import jax.numpy as jnp
from jax.experimental import pallas as pl
from jax.experimental.pallas import tpu as pltpu

EPS = 1e-6


# ---------------------------------------------------------------------------
# Per-generation VMEM sizing: 96 MiB limit / 64 MiB tile budget on 128-MiB
# parts (v5e/v6e); 48 / 28 MiB on 64-MiB parts (v7x).  Falls back to the
# conservative v7x numbers if the hardware query is unavailable (e.g. when the
# kernel is run under the CPU interpreter).
# ---------------------------------------------------------------------------
def _vmem_budgets():
    try:
        cap = pltpu.get_tpu_info().vmem_capacity_bytes
    except Exception:  # not on a TPU device -> conservative default
        cap = 64 * 1024 * 1024
    if cap >= 96 * 1024 * 1024:  # 128 MiB parts (v5e / v6e)
        return 96 * 1024 * 1024, 64 * 1024 * 1024
    return 48 * 1024 * 1024, 28 * 1024 * 1024  # 64 MiB parts (v7x)


_VMEM_LIMIT_BYTES, _TILE_BUDGET_BYTES = _vmem_budgets()
# Aim for a few MiB per double-buffered stream buffer so the fixed ~0.35 us
# per-grid-step pipeline overhead is fully amortized.
_PER_BUFFER_TARGET_BYTES = 6 * 1024 * 1024
# Native sublane multiple per element size (f32 -> 8, bf16 -> 16, int8 -> 32).
_SUBLANE = {4: 8, 2: 16, 1: 32}
# Keep the "parallel" row axis at least this many grid steps so both v7x
# TensorCores get work after the tiles grow.
_MIN_GRID_STEPS = 8


def _row_tile(n_rows, feat, itemsize, n_streams):
    """Row-tile size: sublane-aligned, VMEM-safe, ~MiB per buffer, >= ~8 grid steps."""
    sub = _SUBLANE.get(itemsize, 8)
    if n_rows <= sub:
        return n_rows
    bytes_per_row = feat * itemsize
    # Largest tile whose double-buffered streams still fit the VMEM budget.
    cap = _TILE_BUDGET_BYTES // (n_streams * 2 * bytes_per_row)
    # Per-buffer byte target (amortize per-step overhead).
    tgt = _PER_BUFFER_TARGET_BYTES // bytes_per_row
    # Keep enough grid steps for megacore work-splitting on v7x.
    split = pl.cdiv(n_rows, _MIN_GRID_STEPS)
    tm = min(cap, tgt, split)
    tm = max(sub, (tm // sub) * sub)
    return n_rows if n_rows <= tm else tm


# ---------------------------------------------------------------------------
# Kernel 1: LayerNormalization over the last (lane) axis, row-tiled.
# ---------------------------------------------------------------------------
def _layernorm_kernel(x_ref, w_ref, b_ref, o_ref):
    x = x_ref[...].astype(jnp.float32)
    n = x.shape[-1]
    mean = jnp.mean(x, axis=-1, keepdims=True)
    d = x - mean
    # torch.std uses Bessel's correction (unbiased, ddof=1); eps is added to std.
    var = jnp.sum(d * d, axis=-1, keepdims=True) / (n - 1)
    inv = 1.0 / (jnp.sqrt(var) + EPS)
    y = w_ref[...].astype(jnp.float32) * (d * inv) + b_ref[...].astype(jnp.float32)
    o_ref[...] = y.astype(o_ref.dtype)


def layer_norm(x2d, weights, bias, *, out_dtype=None):
    n, f = x2d.shape
    assert f > 1, "Bessel-corrected std is degenerate for a single feature"
    # out_dtype can be set to e.g. bf16 to halve the HBM write of `normed` (and the
    # sublayer matmul's subsequent read) when the MXU consumes bf16.
    out_dtype = x2d.dtype if out_dtype is None else jnp.dtype(out_dtype)
    itemsize = max(x2d.dtype.itemsize, jnp.dtype(out_dtype).itemsize)
    tm = _row_tile(n, f, itemsize, n_streams=2)  # streams: x in, out
    return pl.pallas_call(
        _layernorm_kernel,
        out_shape=jax.ShapeDtypeStruct((n, f), out_dtype),
        grid=(pl.cdiv(n, tm),),
        in_specs=[
            pl.BlockSpec((tm, f), lambda i: (i, 0)),
            pl.BlockSpec((1, f), lambda i: (0, 0)),  # weights stay resident
            pl.BlockSpec((1, f), lambda i: (0, 0)),  # bias stays resident
        ],
        out_specs=pl.BlockSpec((tm, f), lambda i: (i, 0)),
        compiler_params=pltpu.CompilerParams(
            dimension_semantics=("parallel",),
            vmem_limit_bytes=_VMEM_LIMIT_BYTES,
        ),
    )(x2d, weights.reshape(1, f), bias.reshape(1, f))


# ---------------------------------------------------------------------------
# Kernel 2: residual add with (inverted) dropout on the sublayer output.
#   eval / p == 0 -> dropout is identity, exactly like nn.Dropout.eval()
#   training     -> zero with prob p, scale survivors by 1/(1-p); the random
#                   bits are generated outside (jax.random) and streamed in.
# ---------------------------------------------------------------------------
def _residual_add_kernel(x_ref, s_ref, o_ref):
    o_ref[...] = (
        x_ref[...].astype(jnp.float32) + s_ref[...].astype(jnp.float32)
    ).astype(o_ref.dtype)


def _residual_dropout_kernel(x_ref, s_ref, bits_ref, o_ref, *, thr, inv_keep):
    x = x_ref[...].astype(jnp.float32)
    s = s_ref[...].astype(jnp.float32)
    keep = bits_ref[...] >= jnp.uint32(thr)  # P(keep) = 1 - p, integer compare
    o_ref[...] = (x + jnp.where(keep, s * inv_keep, 0.0)).astype(o_ref.dtype)


def residual_add_dropout(x2d, sub2d, *, p, training, rng_bits=None):
    n, f = x2d.shape
    params = pltpu.CompilerParams(
        dimension_semantics=("parallel",),
        vmem_limit_bytes=_VMEM_LIMIT_BYTES,
    )
    row_spec = lambda tm: pl.BlockSpec((tm, f), lambda i: (i, 0))

    if not training or p <= 0.0:
        tm = _row_tile(n, f, x2d.dtype.itemsize, n_streams=3)  # x, sub, out
        return pl.pallas_call(
            _residual_add_kernel,
            out_shape=jax.ShapeDtypeStruct((n, f), x2d.dtype),
            grid=(pl.cdiv(n, tm),),
            in_specs=[row_spec(tm), row_spec(tm)],
            out_specs=row_spec(tm),
            compiler_params=params,
        )(x2d, sub2d)

    assert rng_bits is not None and rng_bits.shape == (n, f)
    thr = min(int(round(float(p) * (1 << 32))), (1 << 32) - 1)
    inv_keep = 1.0 / (1.0 - float(p))
    kern = functools.partial(_residual_dropout_kernel, thr=thr, inv_keep=inv_keep)
    tm = _row_tile(n, f, 4, n_streams=4)  # x, sub, bits, out (all 4-byte)
    return pl.pallas_call(
        kern,
        out_shape=jax.ShapeDtypeStruct((n, f), x2d.dtype),
        grid=(pl.cdiv(n, tm),),
        in_specs=[row_spec(tm), row_spec(tm), row_spec(tm)],
        out_specs=row_spec(tm),
        compiler_params=params,
    )(x2d, sub2d, rng_bits)


# ---------------------------------------------------------------------------
# Module wrapper mirroring the PyTorch ResidualConnection API.
# ---------------------------------------------------------------------------
class ResidualConnection:
    def __init__(self, features: int, dropout: float):
        self.features = features
        self.p = float(dropout)
        # LayerNormalization params, initialized like the reference (ones / zeros).
        self.weights = jnp.ones((features,), jnp.float32)
        self.bias = jnp.zeros((features,), jnp.float32)
        # Lane-density note: features that are a multiple of 128 keep every store a
        # full unmasked vreg; other widths still work but hit masked partial stores.

    def __call__(self, x, sublayer, *, training=False, rng_key=None):
        b, s, f = x.shape
        assert f == self.features
        x2d = x.reshape(b * s, f)
        # TODO(synk): when `sublayer` is a known matmul, fuse LayerNorm into that
        # matmul's LHS tile load and fold dropout+residual into its accumulator
        # epilogue (saves two full HBM round trips of the (n, f) activation); also
        # pass out_dtype=bf16 to layer_norm when the MXU path consumes bf16.  Kept
        # generic here because the module accepts an arbitrary callable.
        normed = layer_norm(x2d, self.weights, self.bias).reshape(b, s, f)
        sub2d = sublayer(normed).reshape(b * s, f)

        rng_bits = None
        if training and self.p > 0.0:
            if rng_key is None:
                raise ValueError("rng_key is required when training with dropout > 0")
            rng_bits = jax.random.bits(rng_key, (b * s, f), jnp.uint32)

        out2d = residual_add_dropout(
            x2d, sub2d, p=self.p, training=training, rng_bits=rng_bits
        )
        return out2d.reshape(b, s, f)


# ---------------------------------------------------------------------------
# Pure-JAX reference (eval mode) for the correctness check.
# ---------------------------------------------------------------------------
def _reference(x, w, b, sublayer):
    mean = jnp.mean(x, axis=-1, keepdims=True)
    std = jnp.std(x, axis=-1, keepdims=True, ddof=1)
    normed = w * (x - mean) / (std + EPS) + b
    return x + sublayer(normed)


if __name__ == "__main__":
    key = jax.random.PRNGKey(0)
    k_x, k_w, k_drop = jax.random.split(key, 3)

    # Lane-dense demo: features is a multiple of 128 so stores are full vregs.
    batch, seq, features = 2, 8, 128
    x = jax.random.normal(k_x, (batch, seq, features), dtype=jnp.float32)

    # Deterministic example sublayer: a simple linear projection (features -> features).
    w_sub = jax.random.normal(k_w, (features, features), dtype=jnp.float32) * 0.1
    sublayer = lambda y: jnp.dot(y, w_sub)

    block = ResidualConnection(features, dropout=0.1)

    # --- Eval path (dropout == identity), full forward under jit. ---
    fwd_eval = jax.jit(lambda xx: block(xx, sublayer, training=False))
    out = jax.block_until_ready(fwd_eval(x))
    ref = _reference(x, block.weights, block.bias, sublayer)
    assert out.shape == x.shape and out.dtype == x.dtype
    assert jnp.allclose(out, ref, atol=1e-4, rtol=1e-4), "eval mismatch vs reference"

    # --- Training path: inverted dropout driven by jax.random bits, under jit. ---
    fwd_train = jax.jit(lambda xx, kk: block(xx, sublayer, training=True, rng_key=kk))
    out_tr = jax.block_until_ready(fwd_train(x, k_drop))
    assert out_tr.shape == x.shape

    # Exact reference for the training path using the same random bits / threshold.
    p = block.p
    thr = min(int(round(p * (1 << 32))), (1 << 32) - 1)
    bits = jax.random.bits(k_drop, (batch * seq, features), jnp.uint32)
    keep = bits >= jnp.uint32(thr)
    mean = jnp.mean(x, axis=-1, keepdims=True)
    std = jnp.std(x, axis=-1, keepdims=True, ddof=1)
    normed_ref = block.weights * (x - mean) / (std + EPS) + block.bias
    sub_ref = sublayer(normed_ref).reshape(batch * seq, features)
    ref_tr = (
        x.reshape(batch * seq, features)
        + jnp.where(keep, sub_ref * (1.0 / (1.0 - p)), 0.0)
    ).reshape(x.shape)
    assert jnp.allclose(out_tr, ref_tr, atol=1e-4, rtol=1e-4), "train mismatch vs reference"
    assert bool(jnp.all(jnp.isfinite(out_tr)))

    print("KERNEL_OK")
</pallas_src>

<mosaic_0001>
module attributes {stable_mosaic.version = 11 : i64} {
  func.func @_residual_add_kernel(%arg0: i32, %arg1: memref<8x128xf32, #tpu.memory_space<vmem>>, %arg2: memref<8x128xf32, #tpu.memory_space<vmem>>, %arg3: memref<8x128xf32, #tpu.memory_space<vmem>>) attributes {dimension_semantics = [#tpu.dimension_semantics<parallel>], iteration_bounds = array<i64: 2>, scalar_prefetch = 0 : i64, scratch_operands = 0 : i64, tpu.core_type = #tpu.core_type<tc>, window_params = [{transform_indices = @transform_0, window_bounds = array<i64: 8, 128>}, {transform_indices = @transform_1, window_bounds = array<i64: 8, 128>}, {transform_indices = @transform_2, window_bounds = array<i64: 8, 128>}]} {
    %c0 = arith.constant 0 : index
    %c0_0 = arith.constant 0 : index
    %0 = vector.load %arg1[%c0, %c0_0] : memref<8x128xf32, #tpu.memory_space<vmem>>, vector<8x128xf32>
    %c0_1 = arith.constant 0 : index
    %c0_2 = arith.constant 0 : index
    %1 = vector.load %arg2[%c0_1, %c0_2] : memref<8x128xf32, #tpu.memory_space<vmem>>, vector<8x128xf32>
    %2 = arith.addf %0, %1 : vector<8x128xf32>
    %c0_3 = arith.constant 0 : index
    %c0_4 = arith.constant 0 : index
    %3 = vector.load %arg3[%c0_3, %c0_4] : memref<8x128xf32, #tpu.memory_space<vmem>>, vector<8x128xf32>
    tpu.vector_store %arg3[%c0_3, %c0_4], %2 {strides = array<i32>} : memref<8x128xf32, #tpu.memory_space<vmem>>, vector<8x128xf32>,
    return
  }
  func.func @transform_0(%arg0: i32) -> (i32, i32) {
    %c0_i32 = arith.constant 0 : i32
    %c0_i32_0 = arith.constant 0 : i32
    return %arg0, %c0_i32 : i32, i32
  }
  func.func @transform_1(%arg0: i32) -> (i32, i32) {
    %c0_i32 = arith.constant 0 : i32
    %c0_i32_0 = arith.constant 0 : i32
    return %arg0, %c0_i32 : i32, i32
  }
  func.func @transform_2(%arg0: i32) -> (i32, i32) {
    %c0_i32 = arith.constant 0 : i32
    %c0_i32_0 = arith.constant 0 : i32
    return %arg0, %c0_i32 : i32, i32
  }
}

module attributes {stable_mosaic.version = 11 : i64} {
  func.func @_layernorm_kernel(%arg0: i32, %arg1: memref<8x128xf32, #tpu.memory_space<vmem>>, %arg2: memref<1x128xf32, #tpu.memory_space<vmem>>, %arg3: memref<1x128xf32, #tpu.memory_space<vmem>>, %arg4: memref<8x128xf32, #tpu.memory_space<vmem>>) attributes {dimension_semantics = [#tpu.dimension_semantics<parallel>], iteration_bounds = array<i64: 2>, scalar_prefetch = 0 : i64, scratch_operands = 0 : i64, tpu.core_type = #tpu.core_type<tc>, window_params = [{transform_indices = @transform_0, window_bounds = array<i64: 8, 128>}, {pipeline_mode = #tpu.pipeline_mode<synchronous>, transform_indices = @transform_1, window_bounds = array<i64: 1, 128>}, {pipeline_mode = #tpu.pipeline_mode<synchronous>, transform_indices = @transform_2, window_bounds = array<i64: 1, 128>}, {transform_indices = @transform_3, window_bounds = array<i64: 8, 128>}]} {
    %c0 = arith.constant 0 : index
    %c0_0 = arith.constant 0 : index
    %0 = vector.load %arg1[%c0, %c0_0] : memref<8x128xf32, #tpu.memory_space<vmem>>, vector<8x128xf32>
    %cst = arith.constant dense<0.000000e+00> : vector<8xf32>
    %1 = vector.multi_reduction <add>, %0, %cst [1] : vector<8x128xf32> to vector<8xf32>
    %2 = vector.shape_cast %1 : vector<8xf32> to vector<8x1xf32>
    %cst_1 = arith.constant 1.280000e+02 : f32
    %3 = vector.broadcast %cst_1 : f32 to vector<8x1xf32>
    %4 = arith.divf %2, %3 : vector<8x1xf32>
    %5 = vector.broadcast %4 : vector<8x1xf32> to vector<8x128xf32>
    %6 = arith.subf %0, %5 : vector<8x128xf32>
    %7 = arith.mulf %6, %6 : vector<8x128xf32>
    %cst_2 = arith.constant dense<0.000000e+00> : vector<8xf32>
    %8 = vector.multi_reduction <add>, %7, %cst_2 [1] : vector<8x128xf32> to vector<8xf32>
    %9 = vector.shape_cast %8 : vector<8xf32> to vector<8x1xf32>
    %cst_3 = arith.constant 1.270000e+02 : f32
    %10 = vector.broadcast %cst_3 : f32 to vector<8x1xf32>
    %11 = arith.divf %9, %10 : vector<8x1xf32>
    %12 = math.sqrt %11 : vector<8x1xf32>
    %cst_4 = arith.constant 9.99999997E-7 : f32
    %13 = vector.broadcast %cst_4 : f32 to vector<8x1xf32>
    %14 = arith.addf %12, %13 : vector<8x1xf32>
    %cst_5 = arith.constant 1.000000e+00 : f32
    %15 = vector.broadcast %cst_5 : f32 to vector<8x1xf32>
    %16 = arith.divf %15, %14 : vector<8x1xf32>
    %c0_6 = arith.constant 0 : index
    %c0_7 = arith.constant 0 : index
    %17 = vector.load %arg2[%c0_6, %c0_7] : memref<1x128xf32, #tpu.memory_space<vmem>>, vector<1x128xf32>
    %18 = vector.broadcast %16 : vector<8x1xf32> to vector<8x128xf32>
    %19 = arith.mulf %6, %18 : vector<8x128xf32>
    %20 = vector.broadcast %17 : vector<1x128xf32> to vector<8x128xf32>
    %21 = arith.mulf %20, %19 : vector<8x128xf32>
    %c0_8 = arith.constant 0 : index
    %c0_9 = arith.constant 0 : index
    %22 = vector.load %arg3[%c0_8, %c0_9] : memref<1x128xf32, #tpu.memory_space<vmem>>, vector<1x128xf32>
    %23 = vector.broadcast %22 : vector<1x128xf32> to vector<8x128xf32>
    %24 = arith.addf %21, %23 : vector<8x128xf32>
    %c0_10 = arith.constant 0 : index
    %c0_11 = arith.constant 0 : index
    %25 = vector.load %arg4[%c0_10, %c0_11] : memref<8x128xf32, #tpu.memory_space<vmem>>, vector<8x128xf32>
    tpu.vector_store %arg4[%c0_10, %c0_11], %24 {strides = array<i32>} : memref<8x128xf32, #tpu.memory_space<vmem>>, vector<8x128xf32>,
    return
  }
  func.func @transform_0(%arg0: i32) -> (i32, i32) {
    %c0_i32 = arith.constant 0 : i32
    %c0_i32_0 = arith.constant 0 : i32
    return %arg0, %c0_i32 : i32, i32
  }
  func.func @transform_1(%arg0: i32) -> (i32, i32) {
    %c0_i32 = arith.constant 0 : i32
    %c0_i32_0 = arith.constant 0 : i32
    %c0_i32_1 = arith.constant 0 : i32
    return %c0_i32, %c0_i32_0 : i32, i32
  }
  func.func @transform_2(%arg0: i32) -> (i32, i32) {
    %c0_i32 = arith.constant 0 : i32
    %c0_i32_0 = arith.constant 0 : i32
    %c0_i32_1 = arith.constant 0 : i32
    return %c0_i32, %c0_i32_0 : i32, i32
  }
  func.func @transform_3(%arg0: i32) -> (i32, i32) {
    %c0_i32 = arith.constant 0 : i32
    %c0_i32_0 = arith.constant 0 : i32
    return %arg0, %c0_i32 : i32, i32
  }
}

</mosaic_0001>

<bundles_post_ra>
// kernel: _lambda_.3
= control target key start
LH: loop header
LB: loop body
LE: loop exit
PB: predicated region body
PF: predicated region fallthrough
CT: control target
= control target key end

     0   :  { %7 = vsyncpa [#allocation3], 0  ;;  %s463_s0 = inlined_call_operand.vmem [shape: f32[16,128], index: 0, kind: input, shape index: {}]   ;;  %s464_s1 = inlined_call_operand.vmem [shape: f32[16,128], index: 1, kind: input, shape index: {}]   ;;  %s465_s2 = inlined_call_operand.hbm [shape: f32[16,128], index: 2, kind: output, shape index: {}]  }
   0x1   :  { %9 = vsyncpa [#allocation3 + $0x1], 0  ;;  %s373_s9 = smov 0   ;;  %s375_s10 = smov 0  }
   0x2   :  { %s377_s11 = smov 0   ;;  %s379_s12 = smov 0  }
   0x3 LB: > { %s394_s13 = sadd.s32 4294967295, %s355_s12   ;;  %s245_s14 = sadd.s32 4294967294, %s355_s12   ;;  %s355_s12 = sphi %s379_s12, %s471_s12   ;;  %s351_s11 = sphi %s377_s11, %s470_s11   ;;  %s347_s10 = sphi %s375_s10, %s469_s10   ;;  %s343_s9 = sphi %s373_s9, %s468_s9  }
   0x4   : > { %s398_s15 = sadd.s32 1, %s355_s12   ;;  %s74_s16 = sadd.s32 1, %s351_s11 }
   0x5   : > { %s71_s17 = ssub.s32 %s355_s12, %s398_s15  ;;  %p84_p0 = scmp.ne.s32.totalorder %s351_s11, %s347_s10 }
   0x6   : > { %p72_p1 = scmp.eq.s32.totalorder %s71_s17, 0  ;;  %p85_p2 = scmp.eq.s32.totalorder %s394_s13, 1 }
   0x7   : > { %p90_p3 = scmp.ne.s32.totalorder %s347_s10, %s343_s9  ;;  %p91_p4 = scmp.eq.s32.totalorder %s245_s14, 1 }
   0x8   : > { %s409_s18 = scalar_select %p72_p1, %s351_s11, %s74_s16  }
   0x9   : > { %p411_p5 = por %p85_p2, %p84_p0  ;;  %p415_p6 = por %p91_p4, %p90_p3 }
   0xa   : > { %p248_p7 = scmp.ge.s32.totalorder %s355_s12, 1  ;;  %p123_p8 = scmp.lt.s32.totalorder %s355_s12, 3 }
   0xc   : > { %p124_p9 = pnand %p248_p7, %p123_p8 }
   0xd   : > { %s145_s21 = sand.u32 (!%p124_p9), 1, %s347_s10   ;;  %p148_p10 = scmp.lt.s32.totalorder (!%p124_p9), %s394_s13, 1 }
   0xe   : > { %127 = sbr.rel (%p124_p9) target bundleno = 42 (0x2a), region = 28  ;;  %s249_s22 = sshll.u32 (!%p124_p9), %s145_s21, 3 }
   0xf   : > { %s253_s24 = sshll.u32 (!%p124_p9), %s394_s13, 7  ;;  %s147_s26 = scalar_lea.vmem (!%p124_p9), [#allocation2], %s249_s22 }
  0x10   : > { %s174_s27 = sshll.u32 (!%p124_p9), %s147_s26, 4  ;;  %s172_s8 = scalar_lea.hbm (!%p124_p9), %s465_s2, %s253_s24  ;;  %s175_s27 = int_to_ptr.vmem [resolvable:$true] %s174_s27 }
  0x11   : > { %s295_s14 = scalar_lea.vmem (!%p124_p9), %s175_s27, 128  ;;  %s357_s16 = smov (!%p124_p9), [#allocation2]  }
  0x12   : > { %p296_p11 = scmp.ne.s32.totalorder (!%p124_p9), %s175_s27, %s295_s14  ;;  %s299_s17 = sshll.u32 (!%p124_p9), %s357_s16, 4  ;;  %s300_s17 = int_to_ptr.vmem [resolvable:$false] %s299_s17 }
  0x13   : > { %s149_s23 = scalar_select %p148_p10, %s394_s13, 1 }
  0x14   : > { %s161_s13 = scalar_lea.sflag [#allocation3], %s145_s21  ;;  %p297_p12 = pnand %p296_p11, %p411_p5 }
  0x15   : > { %s250_s25 = sshll.u32 %s149_s23, 3  ;;  %s301_s22 = scalar_lea.vmem %s300_s17, 256 }
  0x16   : > { %s151_s30 = scalar_lea.vmem %s463_s0, %s250_s25  ;;  %s155_s5 = scalar_lea.vmem %s464_s1, %s250_s25 }
  0x17   : > { %v156_v0 = vld [vmem:[%s151_s30] sm:$0xff]  ;;  %p298_p13 = pneg %p297_p12  ;;  %p302_p0 = scmp.lt.s32.totalorder %s175_s27, %s300_s17 }
  0x18   : > { %v157_v1 = vld [vmem:[%s155_s5] sm:$0xff]  ;;  %p303_p1 = scmp.lt.s32.totalorder %s301_s22, %s295_s14 }
  0x19   : > { %v158_v2 = vadd.f32 %v157_v1, %v156_v0 }
  0x1a   : > { %p304_p2 = por %p303_p1, %p302_p0 }
  0x1b   : > { %159 = vst [vmem:[%s147_s26] sm:$0xff] %v158_v2 }
  0x1c   : > { %p305_p3 = pnand %p304_p2, %p298_p13 }
  0x1e   : > { %308 = shalt.err (!%p305_p3)
}
  0x1f   : > { %s309_s23 = scalar_lea.hbm %s172_s8, 128  ;;  %s313_s25 = scalar_lea.hbm %s465_s2, 256 }
  0x20   : > { %p310_p4 = scmp.ne.s32.totalorder %s172_s8, %s309_s23  ;;  %p314_p9 = scmp.lt.s32.totalorder %s172_s8, %s465_s2 }
  0x21   : > { %p315_p10 = scmp.lt.s32.totalorder %s313_s25, %s309_s23 }
  0x22   : > { %p311_p7 = pnand %p310_p4, %p411_p5 }
  0x23   : > { %p316_p11 = por %p315_p10, %p314_p9 }
  0x24   : > { %p312_p8 = pneg %p311_p7 }
  0x26   : > { %p317_p12 = pnand %p316_p11, %p312_p8 }
  0x28   : > { %320 = shalt.err (!%p317_p12)
}
  0x29   : > { %256 = dma.vmem_to_hbm [thread:$0]  (%p411_p5), %s175_s27, 128, %s172_s8, %s161_s13  }
  0x2a PF: > { %p262_p13 = scmp.ge.s32.totalorder %s355_s12, 2  ;;  %s186_s29 = sand.u32 1, %s343_s9  }
  0x2b   : > { %s187_s30 = scalar_lea.sflag [#allocation3], %s186_s29 }
  0x2c   : > { %p259_p0 = pnand %p262_p13, %p415_p6 }
  0x2e   : > { %p260_p1 = pneg %p259_p0 }
  0x30   : > { %338 = dma.done.wait (%p260_p1), %s187_s30, 128  }
  0x31   : > { %340 = vsyncadd (%p260_p1), %s187_s30, 4294967168  ;;  %p12_p2 = scmp.ge.s32.totalorder %s398_s15, 4   ;;  %s468_s9 = smov %s347_s10 }
  0x32   : > { %s469_s10 = smov %s351_s11  ;;  %s470_s11 = smov %s409_s18 }
  0x33   : > { %s471_s12 = smov %s398_s15  ;;  %14 = sbr.rel (!%p12_p2) target bundleno = 3 (0x3), region = 66 }
  0x38   :  { %192 = vsyncpa [#allocation3], 1 }
  0x39   :  { %194 = vsyncpa [#allocation3 + $0x1], 1 }

// kernel: _lambda_.2
= control target key start
LH: loop header
LB: loop body
LE: loop exit
PB: predicated region body
PF: predicated region fallthrough
CT: control target
= control target key end

     0   :  { %8 = vsyncpa [#allocation3], 0  ;;  %s536_s0 = inlined_call_operand.hbm [shape: f32[16,128], index: 0, kind: input, shape index: {}]   ;;  %s537_s1 = inlined_call_operand.vmem [shape: f32[1,128], index: 1, kind: input, shape index: {}]   ;;  %s538_s2 = inlined_call_operand.vmem [shape: f32[1,128], index: 2, kind: input, shape index: {}]   ;;  %s539_s3 = inlined_call_operand.vmem [shape: f32[16,128], index: 3, kind: output, shape index: {}]  }
   0x1   :  { %10 = vsyncpa [#allocation3 + $0x1], 0  ;;  %s430_s12 = smov 0   ;;  %s432_s13 = smov 0  }
   0x2   :  { %s434_s14 = smov 0   ;;  %s436_s15 = smov 0  }
   0x3 LB: > { %s449_s16 = sadd.s32 4294967295, %s407_s15   ;;  %s452_s17 = sadd.s32 1, %s407_s15   ;;  %s407_s15 = sphi %s436_s15, %s549_s15   ;;  %s403_s14 = sphi %s434_s14, %s548_s14   ;;  %s399_s13 = sphi %s432_s13, %s547_s13   ;;  %s395_s12 = sphi %s430_s12, %s546_s12  }
   0x4   : > { %s20_s18 = ssub.s32 %s407_s15, %s452_s17  ;;  %s23_s19 = sadd.s32 1, %s403_s14 }
   0x5   : > { %p21_p0 = scmp.eq.s32.totalorder %s20_s18, 0  ;;  %p30_p1 = scmp.ne.s32.totalorder %s403_s14, %s399_s13 }
   0x6   : > { %p31_p2 = scmp.eq.s32.totalorder %s407_s15, 0  ;;  %p36_p3 = scmp.ne.s32.totalorder %s399_s13, %s395_s12 }
   0x7   : > { %s462_s20 = scalar_select %p21_p0, %s403_s14, %s23_s19  }
   0x8   : > { %p32_p4 = por %p31_p2, %p30_p1  ;;  %p37_p5 = scmp.eq.s32.totalorder %s449_s16, 0 }
   0x9   : > { %p308_p6 = scmp.lt.s32.totalorder %s407_s15, 2  ;;  %s134_s22 = sand.u32 1, %s403_s14  }
   0xa   : > { %p466_p7 = por %p37_p5, %p36_p3  ;;  %s293_s23 = sshll.u32 %s134_s22, 3 }
   0xb   : > { %s294_s24 = sshll.u32 %s407_s15, 7  ;;  %s138_s28 = scalar_lea.vmem [#allocation2], %s293_s23 }
   0xc   : > { %s541_s21 = scalar_select %p466_p7, 1, 0 }
   0xd   : > { %s475_s27 = scalar_lea.hbm %s536_s0, %s294_s24  ;;  %s145_s29 = sshll.u32 %s138_s28, 4  ;;  %s477_s29 = int_to_ptr.vmem [resolvable:$true] %s145_s29 }
   0xe   : > { %p479_p8 = pnand %p308_p6, %p32_p4  ;;  %s135_s4 = scalar_lea.sflag [#allocation3], %s134_s22 }
   0xf   : > { %s345_s5 = scalar_lea.hbm %s475_s27, 128  ;;  %s350_s8 = scalar_lea.hbm %s536_s0, 256 }
  0x10   : > { %p346_p11 = scmp.ne.s32.totalorder %s475_s27, %s345_s5  ;;  %p347_p12 = pneg %p479_p8 }
  0x11   : > { %p351_p1 = scmp.lt.s32.totalorder %s475_s27, %s536_s0  ;;  %p352_p2 = scmp.lt.s32.totalorder %s350_s8, %s345_s5 }
  0x12   : > { %p348_p13 = pnand %p347_p12, %p346_p11 }
  0x13   : > { %p353_p3 = por %p352_p2, %p351_p1 }
  0x14   : > { %p349_p0 = pneg %p348_p13 }
  0x16   : > { %p354_p4 = pnand %p353_p3, %p349_p0 }
  0x18   : > { %357 = shalt.err (!%p354_p4)
}
  0x19   : > { %s358_s11 = scalar_lea.vmem %s477_s29, 128  ;;  %s409_s12 = smov [#allocation2]  }
  0x1a   : > { %p359_p5 = scmp.ne.s32.totalorder %s477_s29, %s358_s11  ;;  %s363_s18 = sshll.u32 %s409_s12, 4  ;;  %s364_s18 = int_to_ptr.vmem [resolvable:$false] %s363_s18 }
  0x1b   : > { %s365_s19 = scalar_lea.vmem %s364_s18, 256  ;;  %p366_p13 = scmp.lt.s32.totalorder %s477_s29, %s364_s18 }
  0x1c   : > { %p361_p6 = pnand %p359_p5, %p347_p12  ;;  %p367_p9 = scmp.lt.s32.totalorder %s365_s19, %s358_s11 }
  0x1e   : > { %p362_p11 = pneg %p361_p6  ;;  %p368_p10 = por %p367_p9, %p366_p13 }
  0x20   : > { %p369_p7 = pnand %p368_p10, %p362_p11 }
  0x22   : > { %372 = shalt.err (!%p369_p7)
}
  0x23   : > { %307 = dma.hbm_to_vmem [thread:$0]  (!%p479_p8), %s475_s27, 128, %s477_s29, %s135_s4  }
  0x24   : > { %p543_p0 = scmp.lt.s32.totalorder %s407_s15, 3  ;;  %p544_p1 = scmp.ge.s32.totalorder %s407_s15, 1 }
  0x26   : > { %p151_p12 = pnand %p544_p1, %p543_p0 }
  0x27   : > { %s156_s22 = sand.u32 (!%p151_p12), 1, %s399_s13   ;;  %p545_p9 = scmp.ne.s32.totalorder (!%p151_p12), %s541_s21, 0 }
  0x28   : > { %154 = sbr.rel (%p151_p12) target bundleno = 372 (0x174), region = 32  ;;  %s296_s23 = sshll.u32 (!%p151_p12), %s156_s22, 3 }
  0x29   : > { %s157_s24 = scalar_lea.sflag (!%p151_p12), [#allocation3], %s156_s22  ;;  %s160_s25 = scalar_lea.vmem (!%p151_p12), [#allocation2], %s296_s23 }
  0x2d   : > { %390 = dma.done.wait (%p545_p9), %s157_s24, 128  }
  0x2e   : > { %392 = vsyncadd (%p545_p9), %s157_s24, 4294967168  ;;  %v186_v0 = vld [vmem:[%s160_s25] sm:$0xff]  ;;  %p182_p7 = scmp.lt.s32.totalorder %s449_s16, 1 }
  0x2f   : > { %187 = vadd.xlane.f32.xlu0 %v186_v0  ;;  %v298_v14 = vld [vmem:[%s537_s1] ss:$0 sm:$0xff] }
  0x30   : > { %s551_s16 = smov (!%p182_p7, %s449_s16), 1  ;;  %v299_v16 = vld [vmem:[%s538_s2] ss:$0 sm:$0xff] }
  0x31   : > { %s297_s26 = sshll.u32 %s551_s16, 3 }
  0x32   : > { %s185_s4 = scalar_lea.vmem %s539_s3, %s297_s26 }
  0xb8   : > { %v188_v1 = vpop.xlane.xlu0 %187 }
  0xb9   : > { %v190_v2 = vmul.f32 0.0078125, %v188_v1 }
  0xbb   : > { %v191_v3 = vsub.f32 %v186_v0, %v190_v2 }
  0xbd   : > { %v192_v4 = vmul.f32 %v191_v3, %v191_v3 }
  0xbf   : > { %193 = vadd.xlane.f32.xlu0 %v192_v4 }
 0x148   : > { %v194_v5 = vpop.xlane.xlu0 %193 }
 0x149   : > { %v196_v6 = vmul.f32 0.007874016, %v194_v5 }
 0x14b   : > { %341 = vrsqrt.f32 %v196_v6  ;;  %vm199_vm0 = vcmp.eq.f32.partialorder %v196_v6, inf  ;;  %v202_v9 = vand.u32 2147483648, %v196_v6  ;;  %vm201_vm1 = vcmp.eq.f32.partialorder %v196_v6, 0.0 }
 0x158   : > { %v342_v7 = vpop.eup %341 }
 0x159   : > { %v198_v8 = vmul.f32 %v342_v7, %v196_v6 }
 0x15b   : > { %v200_v10 = vsel %vm199_vm0, %v196_v6, %v198_v8 }
 0x15c   : > { %v203_v11 = vsel %vm201_vm1, %v202_v9, %v200_v10 }
 0x15d   : > { %v204_v12 = vadd.f32 1e-06, %v203_v11 }
 0x15f   : > { %343 = vrcp.f32 %v204_v12 }
 0x16c   : > { %v344_v13 = vpop.eup %343 }
 0x16d   : > { %v208_v15 = vmul.f32 %v344_v13, %v191_v3 }
 0x16f   : > { %v215_v17 = vmul.f32 %v298_v14, %v208_v15 }
 0x171   : > { %v223_v18 = vadd.f32 %v299_v16, %v215_v17 }
 0x173   : > { %224 = vst [vmem:[%s185_s4] sm:$0xff] %v223_v18 }
 0x174 PF: > { %p13_p8 = scmp.ge.s32.totalorder %s452_s17, 4   ;;  %s546_s12 = smov %s399_s13 }
 0x175   : > { %s547_s13 = smov %s403_s14  ;;  %s548_s14 = smov %s462_s20 }
 0x176   : > { %s549_s15 = smov %s452_s17  ;;  %15 = sbr.rel (!%p13_p8) target bundleno = 3 (0x3), region = 72 }
 0x17b   :  { %244 = vsyncpa [#allocation3], 1 }
 0x17c   :  { %246 = vsyncpa [#allocation3 + $0x1], 1 }

</bundles_post_ra>
